<compile_context>
chip_gen: v5e
topology: v5e:2x2
jax: 0.10.0
libtpu: 0.0.40
codegen_flags: <defaults>
</compile_context>

<pallas_src>
import math

import numpy as np
import jax
import jax.numpy as jnp
from jax import lax
from jax.experimental import pallas as pl
from jax.experimental.pallas import tpu as pltpu

# ----- small shapes consistent with the module -----
BATCH = 2
HEIGHT = 16
WIDTH = 16
DIM_INPUT = 4            # input channels
DIM_LAYERS = (8, 8)      # two conv layers
KERNEL = 3
PAD = KERNEL // 2        # 'same' padding for odd kernel, stride 1
CIN_PAD = 8              # pad input channels 4 -> 8 so each height-tap slab is 128 lanes


def cnn_kernel(lhs1_ref, m1_ref, b1_ref, m2u_ref, m2c_ref, m2d_ref, b2_ref, o_ref):
    BH, H = BATCH * HEIGHT, HEIGHT

    # ---------- layer 1: im2row LHS built in the wrapper -> ONE MXU matmul ----------
    y1 = jnp.dot(lhs1_ref[...], m1_ref[...], preferred_element_type=jnp.float32)
    y1 = jnp.maximum(y1 + b1_ref[...], 0.0)                    # (B*H, W*C1) = (32, 128)
    # norm=None and drop_rate=0.0 -> Identity

    # ---------- layer 2: three accumulating K=128 matmuls (one per height tap) -------
    # Height shift = sublane roll (XLU) + one-row mask at every image boundary so rows
    # of adjacent images (batch folded onto the sublane axis) never bleed across.
    row = lax.broadcasted_iota(jnp.int32, (BH, y1.shape[1]), 0) % H
    up = jnp.where(row == 0, 0.0, pltpu.roll(y1, 1, axis=0))            # in[y-1]
    dn = jnp.where(row == H - 1, 0.0, pltpu.roll(y1, BH - 1, axis=0))   # in[y+1]

    y2 = jnp.dot(up, m2u_ref[...], preferred_element_type=jnp.float32)
    y2 = y2 + jnp.dot(y1, m2c_ref[...], preferred_element_type=jnp.float32)
    y2 = y2 + jnp.dot(dn, m2d_ref[...], preferred_element_type=jnp.float32)
    o_ref[...] = jnp.maximum(y2 + b2_ref[...], 0.0)            # (B*H, W*C2) = (32, 128)


def _banded_tap(w_tap, width):
    """Fold one kernel-height tap w_tap: (K, Cin, Cout) of a stride-1 'same' conv into a
    banded matmul operand M of shape (width*Cin, width*Cout) with the width boundary baked
    in (out-of-range dx taps simply omitted), such that
        (row_flat @ M)[x*Cout + co] == sum_{dx,ci} in[x+dx, ci] * w_tap[dx+PAD, ci, co].
    Host-side, one-time weight packing."""
    k, cin, cout = w_tap.shape
    m = np.zeros((width * cin, width * cout), np.float32)
    for kx in range(k):
        dx = kx - PAD
        for x in range(width):
            xs = x + dx
            if 0 <= xs < width:
                m[xs * cin:(xs + 1) * cin, x * cout:(x + 1) * cout] = w_tap[kx]
    return m


def conv_neural_network(x, params):
    """x: (B, H, W, Cin) channels_last float32.  Returns (B, H, W, C2)."""
    B, H, W, Cin = x.shape
    C1, C2 = DIM_LAYERS

    # ---- one-time weight / bias packing (in a real model this happens at load time) ----
    w1 = np.asarray(params["w1"], np.float32)                       # (3,3,Cin,C1) HWIO
    w2 = np.asarray(params["w2"], np.float32)                       # (3,3,C1,C2)  HWIO
    w1 = np.pad(w1, ((0, 0), (0, 0), (0, CIN_PAD - Cin), (0, 0)))   # dummy channels -> 0
    m1 = jnp.asarray(np.concatenate(
        [_banded_tap(w1[ky], W) for ky in range(KERNEL)], axis=0))  # (3*W*CIN_PAD, W*C1) = (384,128)
    m2u = jnp.asarray(_banded_tap(w2[0], W))                        # (W*C1, W*C2) = (128,128), in[y-1]
    m2c = jnp.asarray(_banded_tap(w2[1], W))                        # in[y]
    m2d = jnp.asarray(_banded_tap(w2[2], W))                        # in[y+1]
    b1 = jnp.tile(jnp.asarray(params["b1"], jnp.float32), W).reshape(1, W * C1)   # (1,128)
    b2 = jnp.tile(jnp.asarray(params["b2"], jnp.float32), W).reshape(1, W * C2)   # (1,128)

    # ---- layer-1 im2row built once in XLA (whole batch): (B*H, 3*W*CIN_PAD) = (32,384) ----
    xc = jnp.pad(x, ((0, 0), (0, 0), (0, 0), (0, CIN_PAD - Cin)))   # zero dummy channels
    xf = xc.reshape(B, H, W * CIN_PAD)                              # (B, H, 128)
    xh = jnp.pad(xf, ((0, 0), (PAD, PAD), (0, 0)))                  # zero halo rows
    lhs1 = jnp.concatenate([xh[:, ky:ky + H, :] for ky in range(KERNEL)], axis=-1)
    lhs1 = lhs1.reshape(B * H, KERNEL * W * CIN_PAD)

    vmem = pl.BlockSpec(memory_space=pltpu.MemorySpace.VMEM)        # whole array in VMEM
    out = pl.pallas_call(
        cnn_kernel,
        out_shape=jax.ShapeDtypeStruct((B * H, W * C2), jnp.float32),
        in_specs=[vmem] * 7,
        out_specs=vmem,
    )(lhs1, m1, b1, m2u, m2c, m2d, b2)

    return out.reshape(B, H, W, C2)


def reference(x, params):
    """Plain-JAX reference of the same forward pass (conv -> bias -> ReLU, twice)."""
    y = x
    for w, b in ((params["w1"], params["b1"]), (params["w2"], params["b2"])):
        y = jax.lax.conv_general_dilated(
            y, w, window_strides=(1, 1), padding="SAME",
            dimension_numbers=("NHWC", "HWIO", "NHWC"),
            precision=jax.lax.Precision.HIGHEST)
        y = jnp.maximum(y + b, 0.0)
    return y


def init_params(key):
    k1, k2, k3, k4 = jax.random.split(key, 4)

    def conv_init(kw, kb, cin, cout):
        std = 1.0 / math.sqrt(KERNEL * KERNEL * cin)
        w = jax.random.normal(kw, (KERNEL, KERNEL, cin, cout), jnp.float32) * std  # HWIO
        b = jax.random.normal(kb, (cout,), jnp.float32) * 0.01
        return w, b

    w1, b1 = conv_init(k1, k2, DIM_INPUT, DIM_LAYERS[0])
    w2, b2 = conv_init(k3, k4, DIM_LAYERS[0], DIM_LAYERS[1])
    return {"w1": w1, "b1": b1, "w2": w2, "b2": b2}


if __name__ == "__main__":
    key = jax.random.PRNGKey(0)
    kx, kp = jax.random.split(key)
    x = jax.random.normal(kx, (BATCH, HEIGHT, WIDTH, DIM_INPUT), jnp.float32)
    params = init_params(kp)

    out = conv_neural_network(x, params)
    out = jax.block_until_ready(out)

    ref = reference(x, params)
    assert out.shape == (BATCH, HEIGHT, WIDTH, DIM_LAYERS[-1])
    assert jnp.allclose(out, ref, atol=1e-3, rtol=1e-3), "mismatch vs reference"
    print("KERNEL_OK")
</pallas_src>

<mosaic_0001>
module attributes {stable_mosaic.version = 11 : i64} {
  func.func @cnn_kernel(%arg0: memref<32x384xf32, #tpu.memory_space<vmem>>, %arg1: memref<384x128xf32, #tpu.memory_space<vmem>>, %arg2: memref<1x128xf32, #tpu.memory_space<vmem>>, %arg3: memref<128x128xf32, #tpu.memory_space<vmem>>, %arg4: memref<128x128xf32, #tpu.memory_space<vmem>>, %arg5: memref<128x128xf32, #tpu.memory_space<vmem>>, %arg6: memref<1x128xf32, #tpu.memory_space<vmem>>, %arg7: memref<32x128xf32, #tpu.memory_space<vmem>>) attributes {dimension_semantics = [], scalar_prefetch = 0 : i64, scratch_operands = 0 : i64, tpu.core_type = #tpu.core_type<tc>} {
    %c0 = arith.constant 0 : index
    %c0_0 = arith.constant 0 : index
    %0 = vector.load %arg0[%c0, %c0_0] : memref<32x384xf32, #tpu.memory_space<vmem>>, vector<32x384xf32>
    %c0_1 = arith.constant 0 : index
    %c0_2 = arith.constant 0 : index
    %1 = vector.load %arg1[%c0_1, %c0_2] : memref<384x128xf32, #tpu.memory_space<vmem>>, vector<384x128xf32>
    %cst = arith.constant dense<0.000000e+00> : vector<32x128xf32>
    %2 = tpu.matmul %0, %1, %cst {dimension_numbers = #tpu.dot_dimension_numbers<[1], [0], [0], [1], [0, 0, 1, 1], [], []>} : vector<32x384xf32>, vector<384x128xf32>, vector<32x128xf32> -> vector<32x128xf32>
    %c0_3 = arith.constant 0 : index
    %c0_4 = arith.constant 0 : index
    %3 = vector.load %arg2[%c0_3, %c0_4] : memref<1x128xf32, #tpu.memory_space<vmem>>, vector<1x128xf32>
    %4 = vector.broadcast %3 : vector<1x128xf32> to vector<32x128xf32>
    %5 = arith.addf %2, %4 : vector<32x128xf32>
    %cst_5 = arith.constant 0.000000e+00 : f32
    %6 = vector.broadcast %cst_5 : f32 to vector<32x128xf32>
    %7 = arith.maximumf %5, %6 : vector<32x128xf32>
    %8 = tpu.iota {dimensions = array<i32: 0>} : vector<32x128xi32>
    %c16_i32 = arith.constant 16 : i32
    %c0_i32 = arith.constant 0 : i32
    %9 = arith.cmpi eq, %c16_i32, %c0_i32 : i32
    %c1_i32 = arith.constant 1 : i32
    %10 = arith.select %9, %c1_i32, %c16_i32 : i32
    %11 = vector.broadcast %10 : i32 to vector<32x128xi32>
    %12 = arith.remsi %8, %11 : vector<32x128xi32>
    %c0_i32_6 = arith.constant 0 : i32
    %13 = vector.broadcast %c0_i32_6 : i32 to vector<32x128xi32>
    %14 = arith.cmpi ne, %12, %13 : vector<32x128xi32>
    %c0_i32_7 = arith.constant 0 : i32
    %15 = vector.broadcast %c0_i32_7 : i32 to vector<32x128xi32>
    %16 = arith.cmpi slt, %12, %15 : vector<32x128xi32>
    %c0_i32_8 = arith.constant 0 : i32
    %17 = arith.cmpi slt, %10, %c0_i32_8 : i32
    %18 = vector.broadcast %17 : i1 to vector<32x128xi1>
    %19 = vector.broadcast %18 : vector<32x128xi1> to vector<32x128xi1>
    %20 = arith.xori %16, %19 : vector<32x128xi1>
    %21 = arith.andi %20, %14 : vector<32x128xi1>
    %22 = vector.broadcast %10 : i32 to vector<32x128xi32>
    %23 = arith.addi %12, %22 : vector<32x128xi32>
    %24 = arith.select %21, %23, %12 : vector<32x128xi1>, vector<32x128xi32>
    %c0_i32_9 = arith.constant 0 : i32
    %25 = vector.broadcast %c0_i32_9 : i32 to vector<32x128xi32>
    %26 = arith.cmpi eq, %24, %25 : vector<32x128xi32>
    %c1_i32_10 = arith.constant 1 : i32
    %27 = tpu.dynamic_rotate %7 by %c1_i32_10 dim 0 : vector<32x128xf32>, i32 -> vector<32x128xf32>
    %cst_11 = arith.constant 0.000000e+00 : f32
    %28 = vector.broadcast %cst_11 : f32 to vector<32x128xf32>
    %29 = arith.select %26, %28, %27 : vector<32x128xi1>, vector<32x128xf32>
    %c15_i32 = arith.constant 15 : i32
    %30 = vector.broadcast %c15_i32 : i32 to vector<32x128xi32>
    %31 = arith.cmpi eq, %24, %30 : vector<32x128xi32>
    %c31_i32 = arith.constant 31 : i32
    %32 = tpu.dynamic_rotate %7 by %c31_i32 dim 0 : vector<32x128xf32>, i32 -> vector<32x128xf32>
    %cst_12 = arith.constant 0.000000e+00 : f32
    %33 = vector.broadcast %cst_12 : f32 to vector<32x128xf32>
    %34 = arith.select %31, %33, %32 : vector<32x128xi1>, vector<32x128xf32>
    %c0_13 = arith.constant 0 : index
    %c0_14 = arith.constant 0 : index
    %35 = vector.load %arg3[%c0_13, %c0_14] : memref<128x128xf32, #tpu.memory_space<vmem>>, vector<128x128xf32>
    %cst_15 = arith.constant dense<0.000000e+00> : vector<32x128xf32>
    %36 = tpu.matmul %29, %35, %cst_15 {dimension_numbers = #tpu.dot_dimension_numbers<[1], [0], [0], [1], [0, 0, 1, 1], [], []>} : vector<32x128xf32>, vector<128x128xf32>, vector<32x128xf32> -> vector<32x128xf32>
    %c0_16 = arith.constant 0 : index
    %c0_17 = arith.constant 0 : index
    %37 = vector.load %arg4[%c0_16, %c0_17] : memref<128x128xf32, #tpu.memory_space<vmem>>, vector<128x128xf32>
    %cst_18 = arith.constant dense<0.000000e+00> : vector<32x128xf32>
    %38 = tpu.matmul %7, %37, %cst_18 {dimension_numbers = #tpu.dot_dimension_numbers<[1], [0], [0], [1], [0, 0, 1, 1], [], []>} : vector<32x128xf32>, vector<128x128xf32>, vector<32x128xf32> -> vector<32x128xf32>
    %39 = arith.addf %36, %38 : vector<32x128xf32>
    %c0_19 = arith.constant 0 : index
    %c0_20 = arith.constant 0 : index
    %40 = vector.load %arg5[%c0_19, %c0_20] : memref<128x128xf32, #tpu.memory_space<vmem>>, vector<128x128xf32>
    %cst_21 = arith.constant dense<0.000000e+00> : vector<32x128xf32>
    %41 = tpu.matmul %34, %40, %cst_21 {dimension_numbers = #tpu.dot_dimension_numbers<[1], [0], [0], [1], [0, 0, 1, 1], [], []>} : vector<32x128xf32>, vector<128x128xf32>, vector<32x128xf32> -> vector<32x128xf32>
    %42 = arith.addf %39, %41 : vector<32x128xf32>
    %c0_22 = arith.constant 0 : index
    %c0_23 = arith.constant 0 : index
    %43 = vector.load %arg6[%c0_22, %c0_23] : memref<1x128xf32, #tpu.memory_space<vmem>>, vector<1x128xf32>
    %44 = vector.broadcast %43 : vector<1x128xf32> to vector<32x128xf32>
    %45 = arith.addf %42, %44 : vector<32x128xf32>
    %cst_24 = arith.constant 0.000000e+00 : f32
    %46 = vector.broadcast %cst_24 : f32 to vector<32x128xf32>
    %47 = arith.maximumf %45, %46 : vector<32x128xf32>
    %c0_25 = arith.constant 0 : index
    %c0_26 = arith.constant 0 : index
    %48 = vector.load %arg7[%c0_25, %c0_26] : memref<32x128xf32, #tpu.memory_space<vmem>>, vector<32x128xf32>
    tpu.vector_store %arg7[%c0_25, %c0_26], %47 {strides = array<i32>} : memref<32x128xf32, #tpu.memory_space<vmem>>, vector<32x128xf32>,
    return
  }
}

</mosaic_0001>

<bundles_post_ra>
// kernel: tpu_custom_call.1
= control target key start
LH: loop header
LB: loop body
LE: loop exit
PB: predicated region body
PF: predicated region fallthrough
CT: control target
= control target key end

     0   :  { %12 = vsyncpa [#allocation3], 0  ;;  %s865_s0 = inlined_call_operand.hbm [shape: f32[32,384], index: 0, kind: input, shape index: {}]   ;;  %s866_s1 = inlined_call_operand.hbm [shape: f32[384,128], index: 1, kind: input, shape index: {}]   ;;  %s867_s2 = inlined_call_operand.vmem [shape: f32[1,128], index: 2, kind: input, shape index: {}]   ;;  %s868_s3 = inlined_call_operand.hbm [shape: f32[128,128], index: 3, kind: input, shape index: {}]   ;;  %s869_s4 = inlined_call_operand.hbm [shape: f32[128,128], index: 4, kind: input, shape index: {}]   ;;  %s870_s5 = inlined_call_operand.hbm [shape: f32[128,128], index: 5, kind: input, shape index: {}]   ;;  %s871_s6 = inlined_call_operand.vmem [shape: f32[1,128], index: 6, kind: input, shape index: {}]   ;;  %s872_s7 = inlined_call_operand.hbm [shape: f32[32,128], index: 7, kind: output, shape index: {}]  }
   0x1   :  { %13 = vsyncpa [#allocation6], 0 }
   0x2   :  { %14 = vsyncpa [#allocation9], 0  ;;  %s33_s26 = sshll.u32 %s866_s1, 4  ;;  %s34_s26 = int_to_ptr.hbm [resolvable:$true] %s33_s26 }
   0x3   :  { %15 = vsyncpa [#allocation4], 0  ;;  %s731_s27 = smov [#allocation5]   ;;  %s61_s8 = sshll.u32 %s869_s4, 4  ;;  %s62_s8 = int_to_ptr.hbm [resolvable:$true] %s61_s8 }
   0x4   :  { %s35_s28 = sshll.u32 %s731_s27, 4  ;;  %s732_s9 = smov 128   ;;  %s36_s28 = int_to_ptr.vmem [resolvable:$true] %s35_s28 }
   0x5   :  { %s733_s10 = smov 8   ;;  %s734_s11 = smov [#allocation8]  }
   0x6   :  { %41 = dma.hbm_to_vmem [thread:$0]  %s34_s26, 6144, %s36_s28, [#allocation6], %s732_s9, %s732_s9, %s733_s10  }
   0x7   :  { %s63_s12 = sshll.u32 %s734_s11, 4  ;;  %s20_s14 = sshll.u32 %s865_s0, 4  ;;  %s64_s12 = int_to_ptr.vmem [resolvable:$true] %s63_s12  ;;  %s21_s14 = int_to_ptr.hbm [resolvable:$true] %s20_s14 }
   0x8   :  { %69 = dma.hbm_to_vmem [thread:$0]  %s62_s8, 2048, %s64_s12, [#allocation9], %s732_s9, %s732_s9, %s733_s10  }
   0x9   :  { %s735_s4 = smov [#allocation2]   ;;  %s48_s18 = sshll.u32 %s868_s3, 4  ;;  %s49_s18 = int_to_ptr.hbm [resolvable:$true] %s48_s18 }
   0xa   :  { %s22_s15 = sshll.u32 %s735_s4, 4  ;;  %s736_s19 = smov 384   ;;  %s23_s15 = int_to_ptr.vmem [resolvable:$true] %s22_s15 }
   0xb   :  { %s737_s20 = smov 24   ;;  %s738_s21 = smov [#allocation7]  }
   0xc   :  { %28 = dma.hbm_to_vmem [thread:$0]  %s21_s14, 1536, %s23_s15, [#allocation3], %s736_s19, %s736_s19, %s737_s20  }
   0xd   :  { %s50_s22 = sshll.u32 %s738_s21, 4  ;;  %s74_s24 = sshll.u32 %s870_s5, 4  ;;  %s51_s22 = int_to_ptr.vmem [resolvable:$true] %s50_s22  ;;  %s75_s24 = int_to_ptr.hbm [resolvable:$true] %s74_s24 }
   0xe   :  { %56 = dma.hbm_to_vmem [thread:$0]  %s49_s18, 2048, %s51_s22, [#allocation6], %s732_s9, %s732_s9, %s733_s10  }
   0xf   :  { %s739_s25 = smov [#allocation10]  }
  0x10   :  { %s76_s26 = sshll.u32 %s739_s25, 4  ;;  %s77_s26 = int_to_ptr.vmem [resolvable:$true] %s76_s26 }
  0x11   :  { %82 = dma.hbm_to_vmem [thread:$0]  %s75_s24, 2048, %s77_s26, [#allocation9], %s732_s9, %s732_s9, %s733_s10  }
  0x12   :  { %723 = dma.done.wait [#allocation3], 1536  }
  0x13   :  { %724 = vsyncadd [#allocation3], 4294965760 }
  0x14   :  { %725 = dma.done.wait [#allocation6], 8192  }
  0x15   :  { %726 = vsyncadd [#allocation6], 4294959104 }
  0x16   :  { %727 = dma.done.wait [#allocation9], 4096  }
  0x17   :  { %728 = vsyncadd [#allocation9], 4294963200  ;;  %v164_v0 = vld [vmem:[#allocation5 + $0x178] sm:$0xff]  ;;  %v163_v2 = vld [vmem:[#allocation5 + $0x170] sm:$0xff]  ;;  %s508_s8 = sshll.u32 %s872_s7, 4  ;;  %s509_s8 = int_to_ptr.hbm [resolvable:$true] %s508_s8 }
  0x18   :  { %v132_v1 = vld [vmem:[#allocation5 + $0x78] sm:$0xff]  ;;  %227 = vmatpush.msra.mxu2 %v164_v0  ;;  %v131_v3 = vld [vmem:[#allocation5 + $0x70] sm:$0xff]  ;;  %v162_v5 = vld [vmem:[#allocation5 + $0x168] sm:$0xff] }
  0x19   :  { %169 = vmatpush.msra.mxu0 %v132_v1  ;;  %v148_v4 = vld [vmem:[#allocation5 + $0xf8] sm:$0xff]  ;;  %v130_v6 = vld [vmem:[#allocation5 + $0x68] sm:$0xff]  ;;  %v147_v7 = vld [vmem:[#allocation5 + $0xf0] sm:$0xff] }
  0x1a   :  { %198 = vmatpush.msra.mxu1 %v148_v4  ;;  %228 = vmatpush.msra.mxu2 %v163_v2  ;;  %v146_v8 = vld [vmem:[#allocation5 + $0xe8] sm:$0xff]  ;;  %v161_v9 = vld [vmem:[#allocation5 + $0x160] sm:$0xff]  ;;  %v160_v12 = vld [vmem:[#allocation5 + $0x158] sm:$0xff] }
  0x1b   :  { %170 = vmatpush.msra.mxu0 %v131_v3  ;;  %v129_v10 = vld [vmem:[#allocation5 + $0x60] sm:$0xff]  ;;  %v128_v13 = vld [vmem:[#allocation5 + $0x58] sm:$0xff]  ;;  %v159_v15 = vld [vmem:[#allocation5 + $0x150] sm:$0xff] }
  0x1c   :  { %199 = vmatpush.msra.mxu1 %v147_v7  ;;  %229 = vmatpush.msra.mxu2 %v162_v5  ;;  %v145_v11 = vld [vmem:[#allocation5 + $0xe0] sm:$0xff]  ;;  %v144_v14 = vld [vmem:[#allocation5 + $0xd8] sm:$0xff]  ;;  %v127_v16 = vld [vmem:[#allocation5 + $0x50] sm:$0xff] }
  0x1d   :  { %171 = vmatpush.msra.mxu0 %v130_v6  ;;  %v143_v17 = vld [vmem:[#allocation5 + $0xd0] sm:$0xff]  ;;  %v158_v18 = vld [vmem:[#allocation5 + $0x148] sm:$0xff]  ;;  %v157_v21 = vld [vmem:[#allocation5 + $0x140] sm:$0xff] }
  0x1e   :  { %200 = vmatpush.msra.mxu1 %v146_v8  ;;  %230 = vmatpush.msra.mxu2 %v161_v9  ;;  %v126_v19 = vld [vmem:[#allocation5 + $0x48] sm:$0xff]  ;;  %v125_v22 = vld [vmem:[#allocation5 + $0x40] sm:$0xff]  ;;  %v156_v24 = vld [vmem:[#allocation5 + $0x138] sm:$0xff] }
  0x1f   :  { %172 = vmatpush.msra.mxu0 %v129_v10  ;;  %v142_v20 = vld [vmem:[#allocation5 + $0xc8] sm:$0xff]  ;;  %v141_v23 = vld [vmem:[#allocation5 + $0xc0] sm:$0xff]  ;;  %v124_v25 = vld [vmem:[#allocation5 + $0x38] sm:$0xff] }
  0x20   :  { %201 = vmatpush.msra.mxu1 %v145_v11  ;;  %231 = vmatpush.msra.mxu2 %v160_v12  ;;  %v140_v26 = vld [vmem:[#allocation5 + $0xb8] sm:$0xff]  ;;  %v155_v27 = vld [vmem:[#allocation5 + $0x130] sm:$0xff]  ;;  %v154_v30 = vld [vmem:[#allocation5 + $0x128] sm:$0xff] }
  0x21   :  { %173 = vmatpush.msra.mxu0 %v128_v13  ;;  %v123_v28 = vld [vmem:[#allocation5 + $0x30] sm:$0xff]  ;;  %v122_v31 = vld [vmem:[#allocation5 + $0x28] sm:$0xff]  ;;  %v153_v33 = vld [vmem:[#allocation5 + $0x120] sm:$0xff] }
  0x22   :  { %202 = vmatpush.msra.mxu1 %v144_v14  ;;  %232 = vmatpush.msra.mxu2 %v159_v15  ;;  %v139_v29 = vld [vmem:[#allocation5 + $0xb0] sm:$0xff]  ;;  %v138_v32 = vld [vmem:[#allocation5 + $0xa8] sm:$0xff]  ;;  %v121_v34 = vld [vmem:[#allocation5 + $0x20] sm:$0xff] }
  0x23   :  { %174 = vmatpush.msra.mxu0 %v127_v16  ;;  %v137_v35 = vld [vmem:[#allocation5 + $0xa0] sm:$0xff]  ;;  %v152_v36 = vld [vmem:[#allocation5 + $0x118] sm:$0xff]  ;;  %v151_v39 = vld [vmem:[#allocation5 + $0x110] sm:$0xff] }
  0x24   :  { %203 = vmatpush.msra.mxu1 %v143_v17  ;;  %233 = vmatpush.msra.mxu2 %v158_v18  ;;  %v120_v37 = vld [vmem:[#allocation5 + $0x18] sm:$0xff]  ;;  %v119_v40 = vld [vmem:[#allocation5 + $0x10] sm:$0xff]  ;;  %v150_v42 = vld [vmem:[#allocation5 + $0x108] sm:$0xff] }
  0x25   :  { %175 = vmatpush.msra.mxu0 %v126_v19  ;;  %v136_v38 = vld [vmem:[#allocation5 + $0x98] sm:$0xff]  ;;  %v135_v41 = vld [vmem:[#allocation5 + $0x90] sm:$0xff]  ;;  %v118_v43 = vld [vmem:[#allocation5 + $0x8] sm:$0xff] }
  0x26   :  { %204 = vmatpush.msra.mxu1 %v142_v20  ;;  %234 = vmatpush.msra.mxu2 %v157_v21  ;;  %v378_v44 = vld [vmem:[#allocation8 + $0x78] sm:$0xff]  ;;  %v134_v45 = vld [vmem:[#allocation5 + $0x88] sm:$0xff]  ;;  %v377_v46 = vld [vmem:[#allocation8 + $0x70] sm:$0xff] }
  0x27   :  { %176 = vmatpush.msra.mxu0 %v125_v22  ;;  %v149_v47 = vld [vmem:[#allocation5 + $0x100] sm:$0xff]  ;;  %379 = vmatpush.msra.mxu3 %v378_v44  ;;  %v107_v49 = vld [vmem:[#allocation2 + $0x10] sm:$0xff]  ;;  %v376_v52 = vld [vmem:[#allocation8 + $0x68] sm:$0xff] }
  0x28   :  { %205 = vmatpush.msra.mxu1 %v141_v23  ;;  %235 = vmatpush.msra.mxu2 %v156_v24  ;;  %v117_v48 = vld [vmem:[#allocation5] sm:$0xff]  ;;  %v106_v53 = vld [vmem:[#allocation2 + $0x8] sm:$0xff]  ;;  %v362_v54 = vld [vmem:[#allocation7 + $0x78] sm:$0xff] }
  0x29   :  { %177 = vmatpush.msra.mxu0 %v124_v25  ;;  %v105_v50 = vld [vmem:[#allocation2] sm:$0xff]  ;;  %380 = vmatpush.msra.mxu3 %v377_v46  ;;  %v808_v56 = vld [vmem:[#allocation10 + $0x78] sm:$0xff]  ;;  %v361_v57 = vld [vmem:[#allocation7 + $0x70] sm:$0xff] }
  0x2a   :  { %206 = vmatpush.msra.mxu1 %v140_v26  ;;  %236 = vmatpush.msra.mxu2 %v155_v27  ;;  %v133_v51 = vld [vmem:[#allocation5 + $0x80] sm:$0xff]  ;;  %v374_v58 = vld [vmem:[#allocation8 + $0x58] sm:$0xff]  ;;  %v810_v59 = vld [vmem:[#allocation10 + $0x70] sm:$0xff] }
  0x2b   :  { %178 = vmatpush.msra.mxu0 %v123_v28  ;;  %v375_v55 = vld [vmem:[#allocation8 + $0x60] sm:$0xff]  ;;  %381 = vmatpush.msra.mxu3 %v376_v52  ;;  %v373_v60 = vld [vmem:[#allocation8 + $0x50] sm:$0xff]  ;;  %v813_v61 = vld [vmem:[#allocation10 + $0x68] sm:$0xff] }
  0x2c   :  { %207 = vmatpush.msra.mxu1 %v139_v29  ;;  %237 = vmatpush.msra.mxu2 %v154_v30  ;;  %v110_v62 = vld [vmem:[#allocation2 + $0x28] sm:$0xff]  ;;  %v108_v63 = vld [vmem:[#allocation2 + $0x18] sm:$0xff]  ;;  %v816_v1 = vld [vmem:[#allocation10 + $0x60] sm:$0xff] }
  0x2d   :  { %179 = vmatpush.msra.mxu0 %v122_v31  ;;  %382 = vmatpush.msra.mxu3 %v375_v55  ;;  %v372_v0 = vld [vmem:[#allocation8 + $0x48] sm:$0xff]  ;;  %v109_v2 = vld [vmem:[#allocation2 + $0x20] sm:$0xff]  ;;  %v819_v4 = vld [vmem:[#allocation10 + $0x58] sm:$0xff]  ;;  %v260_v55 = vlaneseq }
  0x2e   :  { %208 = vmatpush.msra.mxu1 %v138_v32  ;;  %238 = vmatpush.msra.mxu2 %v153_v33  ;;  %v371_v3 = vld [vmem:[#allocation8 + $0x40] sm:$0xff]  ;;  %v370_v5 = vld [vmem:[#allocation8 + $0x38] sm:$0xff]  ;;  %v822_v6 = vld [vmem:[#allocation10 + $0x50] sm:$0xff] }
  0x2f   :  { %180 = vmatpush.msra.mxu0 %v121_v34  ;;  %383 = vmatpush.msra.mxu3 %v374_v58  ;;  %v369_v7 = vld [vmem:[#allocation8 + $0x30] sm:$0xff]  ;;  %v113_v8 = vld [vmem:[#allocation2 + $0x40] sm:$0xff]  ;;  %v368_v10 = vld [vmem:[#allocation8 + $0x28] sm:$0xff]  ;;  %v261_v58 = vshrl.u32 %v260_v55, 7 }
  0x30   :  { %209 = vmatpush.msra.mxu1 %v137_v35  ;;  %239 = vmatpush.msra.mxu2 %v152_v36  ;;  %v111_v9 = vld [vmem:[#allocation2 + $0x30] sm:$0xff]  ;;  %v112_v11 = vld [vmem:[#allocation2 + $0x38] sm:$0xff]  ;;  %v114_v13 = vld [vmem:[#allocation2 + $0x48] sm:$0xff] }
  0x31   :  { %181 = vmatpush.msra.mxu0 %v120_v37  ;;  %384 = vmatpush.msra.mxu3 %v373_v60  ;;  %v116_v12 = vld [vmem:[#allocation2 + $0x58] sm:$0xff]  ;;  %v115_v14 = vld [vmem:[#allocation2 + $0x50] sm:$0xff]  ;;  %v367_v15 = vld [vmem:[#allocation8 + $0x20] sm:$0xff]  ;;  %vm338_vm0 = vcmp.lt.s32.totalorder %v261_v58, 7  ;;  %vm321_vm3 = vcmp.lt.s32.totalorder %v261_v58, 1 }
  0x32   :  { %210 = vmatpush.msra.mxu1 %v136_v38  ;;  %240 = vmatpush.msra.mxu2 %v151_v39  ;;  %v360_v16 = vld [vmem:[#allocation7 + $0x68] sm:$0xff]  ;;  %v366_v18 = vld [vmem:[#allocation8 + $0x18] sm:$0xff]  ;;  %v359_v19 = vld [vmem:[#allocation7 + $0x60] sm:$0xff] }
  0x33   :  { %182 = vmatpush.msra.mxu0 %v119_v40  ;;  %385 = vmatpush.msra.mxu3 %v372_v0  ;;  %v826_v17 = vld [vmem:[#allocation10 + $0x48] sm:$0xff]  ;;  %v829_v20 = vld [vmem:[#allocation10 + $0x40] sm:$0xff]  ;;  %v365_v21 = vld [vmem:[#allocation8 + $0x10] sm:$0xff]  ;;  %v263_v0 = vadd.s32 16, %v261_v58 }
  0x34   :  { %211 = vmatpush.msra.mxu1 %v135_v41  ;;  %241 = vmatpush.msra.mxu2 %v150_v42  ;;  %v358_v22 = vld [vmem:[#allocation7 + $0x58] sm:$0xff]  ;;  %v364_v24 = vld [vmem:[#allocation8 + $0x8] sm:$0xff]  ;;  %v357_v25 = vld [vmem:[#allocation7 + $0x50] sm:$0xff] }
  0x35   :  { %183 = vmatpush.msra.mxu0 %v118_v43  ;;  %386 = vmatpush.msra.mxu3 %v371_v3  ;;  %v444_v23 = vld [vmem:[#allocation10 + $0x38] sm:$0xff]  ;;  %v443_v26 = vld [vmem:[#allocation10 + $0x30] sm:$0xff]  ;;  %v363_v27 = vld [vmem:[#allocation8] sm:$0xff] }
  0x36   :  { %212 = vmatpush.msra.mxu1 %v134_v45  ;;  %242 = vmatpush.msra.mxu2 %v149_v47  ;;  %v356_v28 = vld [vmem:[#allocation7 + $0x48] sm:$0xff]  ;;  %v355_v30 = vld [vmem:[#allocation7 + $0x40] sm:$0xff]  ;;  %v354_v32 = vld [vmem:[#allocation7 + $0x38] sm:$0xff] }
  0x37   :  { %184 = vmatpush.msra.mxu0 %v117_v48  ;;  %243 = vmatmul.f32.vlgmr.msra.gmra.mxu2 %v107_v49  ;;  %v442_v29 = vld [vmem:[#allocation10 + $0x28] sm:$0xff]  ;;  %v441_v31 = vld [vmem:[#allocation10 + $0x20] sm:$0xff]  ;;  %v440_v33 = vld [vmem:[#allocation10 + $0x18] sm:$0xff] }
  0x38   :  { %185 = vmatmul.f32.vlgmr.msra.gmra.mxu0 %v105_v50  ;;  %213 = vmatpush.msra.mxu1 %v133_v51  ;;  %v353_v34 = vld [vmem:[#allocation7 + $0x30] sm:$0xff]  ;;  %v352_v36 = vld [vmem:[#allocation7 + $0x28] sm:$0xff]  ;;  %v351_v38 = vld [vmem:[#allocation7 + $0x20] sm:$0xff] }
  0x39   :  { %214 = vmatmul.f32.vlgmr.msra.gmra.mxu1 %v106_v53  ;;  %535 = vmatpush.msrb.mxu2 %v362_v54  ;;  %v439_v35 = vld [vmem:[#allocation10 + $0x10] sm:$0xff]  ;;  %v438_v37 = vld [vmem:[#allocation10 + $0x8] sm:$0xff]  ;;  %v437_v39 = vld [vmem:[#allocation10] sm:$0xff] }
  0x3a   :  { %453 = vmatpush.msrb.mxu1 %v808_v56  ;;  %408 = vmatpush.msrb.mxu0 %v362_v54  ;;  %v350_v40 = vld [vmem:[#allocation7 + $0x18] sm:$0xff]  ;;  %v349_v41 = vld [vmem:[#allocation7 + $0x10] sm:$0xff]  ;;  %v348_v42 = vld [vmem:[#allocation7 + $0x8] sm:$0xff] }
  0x3b   :  { %536 = vmatpush.msrb.mxu2 %v361_v57  ;;  %387 = vmatpush.msra.mxu3 %v370_v5  ;;  %v347_v43 = vld [vmem:[#allocation7] sm:$0xff] }
  0x3c   :  { %454 = vmatpush.msrb.mxu1 %v810_v59  ;;  %409 = vmatpush.msrb.mxu0 %v361_v57  ;;  %v577_v44 = vld [vmem:[%s867_s2] ss:$0 sm:$0xff] }
  0x3d   :  { %388 = vmatpush.msra.mxu3 %v369_v7  ;;  %537 = vmatpush.msrb.mxu2 %v360_v16  ;;  %v283_v7 = vand.u32 15, %v263_v0 }
  0x3e   :  { %455 = vmatpush.msrb.mxu1 %v813_v61  ;;  %410 = vmatpush.msrb.mxu0 %v360_v16 }
  0x3f   :  { %246 = vmatmul.f32.gmra.mxu2 %v110_v62  ;;  %389 = vmatpush.msra.mxu3 %v368_v10  ;;  %vm532_vm1 = vcmp.ne.s32.totalorder %v283_v7, 0 }
  0x40   :  { %188 = vmatmul.f32.gmra.mxu0 %v108_v63  ;;  %456 = vmatpush.msrb.mxu1 %v816_v1 }
  0x41   :  { %217 = vmatmul.f32.gmra.mxu1 %v109_v2  ;;  %390 = vmatpush.msra.mxu3 %v367_v15 }
  0x42   :  { %457 = vmatpush.msrb.mxu1 %v819_v4  ;;  %538 = vmatpush.msrb.mxu2 %v359_v19 }
  0x43   :  { %391 = vmatpush.msra.mxu3 %v366_v18  ;;  %411 = vmatpush.msrb.mxu0 %v359_v19 }
  0x44   :  { %458 = vmatpush.msrb.mxu1 %v822_v6  ;;  %539 = vmatpush.msrb.mxu2 %v358_v22 }
  0x45   :  { %392 = vmatpush.msra.mxu3 %v365_v21  ;;  %412 = vmatpush.msrb.mxu0 %v358_v22  ;;  %v269_v22 = vand.u32 15, %v261_v58 }
  0x46   :  { %459 = vmatpush.msrb.mxu1 %v826_v17  ;;  %540 = vmatpush.msrb.mxu2 %v357_v25 }
  0x47   :  { %249 = vmatmul.f32.gmra.mxu2 %v113_v8  ;;  %393 = vmatpush.msra.mxu3 %v364_v24  ;;  %vm531_vm4 = vcmp.ne.s32.totalorder %v269_v22, 0 }
  0x48   :  { %191 = vmatmul.f32.gmra.mxu0 %v111_v9  ;;  %460 = vmatpush.msrb.mxu1 %v829_v20 }
  0x49   :  { %220 = vmatmul.f32.gmra.mxu1 %v112_v11  ;;  %394 = vmatpush.msra.mxu3 %v363_v27 }
  0x4a   :  { %461 = vmatpush.msrb.mxu1 %v444_v23  ;;  %413 = vmatpush.msrb.mxu0 %v357_v25 }
  0x4b   :  { %541 = vmatpush.msrb.mxu2 %v356_v28  ;;  %551 = vmatpush.msrb.mxu3 %v808_v56 }
  0x4c   :  { %462 = vmatpush.msrb.mxu1 %v443_v26  ;;  %414 = vmatpush.msrb.mxu0 %v356_v28 }
  0x4d   :  { %542 = vmatpush.msrb.mxu2 %v355_v30  ;;  %552 = vmatpush.msrb.mxu3 %v810_v59 }
  0x4e   :  { %463 = vmatpush.msrb.mxu1 %v442_v29  ;;  %415 = vmatpush.msrb.mxu0 %v355_v30 }
  0x4f   :  { %252 = vmatmul.f32.gmra.mxu2 %v116_v12  ;;  %553 = vmatpush.msrb.mxu3 %v813_v61 }
  0x50   :  { %194 = vmatmul.f32.gmra.mxu0 %v114_v13  ;;  %464 = vmatpush.msrb.mxu1 %v441_v31 }
  0x51   :  { %223 = vmatmul.f32.gmra.mxu1 %v115_v14  ;;  %543 = vmatpush.msrb.mxu2 %v354_v32 }
  0x52   :  { %465 = vmatpush.msrb.mxu1 %v440_v33  ;;  %416 = vmatpush.msrb.mxu0 %v354_v32 }
  0x53   :  { %544 = vmatpush.msrb.mxu2 %v353_v34  ;;  %554 = vmatpush.msrb.mxu3 %v816_v1  ;;  %v262_v1 = vadd.s32 8, %v261_v58 }
  0x54   :  { %466 = vmatpush.msrb.mxu1 %v439_v35  ;;  %417 = vmatpush.msrb.mxu0 %v353_v34 }
  0x55   :  { %545 = vmatpush.msrb.mxu2 %v352_v36  ;;  %555 = vmatpush.msrb.mxu3 %v819_v4  ;;  %v276_v8 = vand.u32 15, %v262_v1 }
  0x56   :  { %467 = vmatpush.msrb.mxu1 %v438_v37  ;;  %418 = vmatpush.msrb.mxu0 %v352_v36 }
  0x57   :  { %546 = vmatpush.msrb.mxu2 %v351_v38  ;;  %556 = vmatpush.msrb.mxu3 %v822_v6  ;;  %vm533_vm2 = vcmp.ne.s32.totalorder %v276_v8, 15 }
  0x58   :  { %468 = vmatpush.msrb.mxu1 %v437_v39  ;;  %419 = vmatpush.msrb.mxu0 %v351_v38 }
  0x59   :  { %547 = vmatpush.msrb.mxu2 %v350_v40  ;;  %557 = vmatpush.msrb.mxu3 %v826_v17 }
  0x5a   :  { %420 = vmatpush.msrb.mxu0 %v350_v40  ;;  %v578_v40 = vld [vmem:[%s871_s6] ss:$0 sm:$0xff]  ;;  %s740_s6 = smov [#allocation11]  }
  0x5b   :  { %548 = vmatpush.msrb.mxu2 %v349_v41  ;;  %558 = vmatpush.msrb.mxu3 %v829_v20  ;;  %s506_s28 = sshll.u32 %s740_s6, 4  ;;  %s507_s28 = int_to_ptr.vmem [resolvable:$true] %s506_s28 }
  0x5c   :  { %421 = vmatpush.msrb.mxu0 %v349_v41 }
  0x5d   :  { %549 = vmatpush.msrb.mxu2 %v348_v42  ;;  %559 = vmatpush.msrb.mxu3 %v444_v23 }
  0x5e   :  { %422 = vmatpush.msrb.mxu0 %v348_v42 }
  0x5f   :  { %550 = vmatpush.msrb.mxu2 %v347_v43  ;;  %560 = vmatpush.msrb.mxu3 %v443_v26 }
  0x60   :  { %423 = vmatpush.msrb.mxu0 %v347_v43 }
  0x61   :  { %561 = vmatpush.msrb.mxu3 %v442_v29  ;;  %v264_v29 = vadd.s32 24, %v261_v58 }
  0x63   :  { %562 = vmatpush.msrb.mxu3 %v441_v31  ;;  %v290_v31 = vand.u32 15, %v264_v29 }
  0x65   :  { %563 = vmatpush.msrb.mxu3 %v440_v33  ;;  %vm534_vm5 = vcmp.ne.s32.totalorder %v290_v31, 15 }
  0x67   :  { %564 = vmatpush.msrb.mxu3 %v439_v35 }
  0x69   :  { %565 = vmatpush.msrb.mxu3 %v438_v37 }
  0x6b   :  { %566 = vmatpush.msrb.mxu3 %v437_v39 }
  0xb5   :  { %v186_v45 = vpop.f32.mrf.mxu0 }
  0xb6   :  { %v187_v46 = vadd.f32 %v577_v44, %v186_v45  ;;  %v215_v47 = vpop.f32.mrf.mxu1 }
  0xb8   :  { %v216_v48 = vadd.f32 %v215_v47, %v187_v46 }
  0xba   :  { %v244_v49 = vpop.f32.mrf.mxu2 }
  0xbb   :  { %v245_v50 = vadd.f32 %v244_v49, %v216_v48 }
  0xbd   :  { %v189_v51 = vpop.f32.mrf.mxu0  ;;  %v843_v52 = vmax.f32 %v245_v50, 0.0 }
  0xbe   :  { %v190_v53 = vadd.f32 %v577_v44, %v189_v51  ;;  %v218_v54 = vpop.f32.mrf.mxu1 }
  0xbf   :  { %395 = vmatmul.f32.vlgmr.msra.gmra.mxu3 %v843_v52  ;;  %v334_v2 = vrot.slane %v843_v52, 1  ;;  %v317_v24 = vrot.slane %v843_v52, 7 }
  0xc0   :  { %v219_v56 = vadd.f32 %v218_v54, %v190_v53 }
  0xc2   :  { %v247_v57 = vpop.f32.mrf.mxu2 }
  0xc3   :  { %v248_v59 = vadd.f32 %v247_v57, %v219_v56 }
  0xc5   :  { %v192_v60 = vpop.f32.mrf.mxu0  ;;  %v257_v61 = vmax.f32 %v248_v59, 0.0 }
  0xc6   :  { %v193_v62 = vadd.f32 %v577_v44, %v192_v60  ;;  %v221_v63 = vpop.f32.mrf.mxu1 }
  0xc7   :  { %v335_v3 = vrot.slane %v257_v61, 1  ;;  %398 = vmatmul.f32.gmra.mxu3 %v257_v61  ;;  %v318_v14 = vrot.slane %v257_v61, 7 }
  0xc8   :  { %v222_v4 = vadd.f32 %v221_v63, %v193_v62 }
  0xc9   :  { %v341_v5 = vsel %vm338_vm0, %v334_v2, %v335_v3  ;;  %v324_v32 = vsel %vm321_vm3, %v317_v24, %v318_v14 }
  0xca   :  { %v250_v6 = vpop.f32.mrf.mxu2  ;;  %469 = vmatmul.f32.vlgmr.msrb.gmra.mxu1 %v341_v5 }
  0xcb   :  { %v251_v9 = vadd.f32 %v250_v6, %v222_v4 }
  0xcd   :  { %v195_v10 = vpop.f32.mrf.mxu0  ;;  %v258_v11 = vmax.f32 %v251_v9, 0.0 }
  0xce   :  { %v196_v12 = vadd.f32 %v577_v44, %v195_v10  ;;  %v224_v13 = vpop.f32.mrf.mxu1 }
  0xcf   :  { %v319_v15 = vrot.slane %v258_v11, 7  ;;  %v336_v16 = vrot.slane %v258_v11, 1  ;;  %401 = vmatmul.f32.gmra.mxu3 %v258_v11 }
  0xd0   :  { %v225_v17 = vadd.f32 %v224_v13, %v196_v12 }
  0xd1   :  { %v323_v18 = vsel %vm321_vm3, %v318_v14, %v319_v15  ;;  %v340_v19 = vsel %vm338_vm0, %v335_v3, %v336_v16 }
  0xd2   :  { %v253_v20 = vpop.f32.mrf.mxu2  ;;  %526 = vmatmul.msk.f32.vlgmr.msrb.gmra.mxu2 %vm532_vm1, %v323_v18  ;;  %528 = vmatmul.msk.f32.gmra.mxu1 %vm533_vm2, %v340_v19 }
  0xd3   :  { %v254_v21 = vadd.f32 %v253_v20, %v225_v17 }
  0xd5   :  { %v259_v23 = vmax.f32 %v254_v21, 0.0 }
  0xd7   :  { %v320_v25 = vrot.slane %v259_v23, 7  ;;  %404 = vmatmul.f32.gmra.mxu3 %v259_v23  ;;  %v337_v28 = vrot.slane %v259_v23, 1 }
  0xd9   :  { %v325_v26 = vsel %vm321_vm3, %v320_v25, %v317_v24  ;;  %v322_v27 = vsel %vm321_vm3, %v319_v15, %v320_v25  ;;  %v339_v30 = vsel %vm338_vm0, %v336_v16, %v337_v28  ;;  %v342_v33 = vsel %vm338_vm0, %v337_v28, %v334_v2 }
  0xda   :  { %524 = vmatmul.msk.f32.vlgmr.msrb.gmra.mxu0 %vm531_vm4, %v325_v26  ;;  %433 = vmatmul.f32.gmra.mxu2 %v322_v27 }
  0xdf   :  { %475 = vmatmul.f32.vlgmr.msrb.gmra.mxu3 %v339_v30 }
  0xe2   :  { %427 = vmatmul.f32.gmra.mxu0 %v324_v32 }
  0xe7   :  { %530 = vmatmul.msk.f32.gmra.mxu3 %vm534_vm5, %v342_v33 }
 0x142   :  { %v396_v34 = vpop.f32.mrf.mxu3 }
 0x147   :  { %v470_v37 = vpop.f32.mrf.mxu1 }
 0x14a   :  { %v399_v35 = vpop.f32.mrf.mxu3 }
 0x14f   :  { %v473_v48 = vpop.f32.mrf.mxu1 }
 0x152   :  { %v402_v36 = vpop.f32.mrf.mxu3 }
 0x155   :  { %v431_v43 = vpop.f32.mrf.mxu2 }
 0x156   :  { %v432_v49 = vadd.f32 %v431_v43, %v402_v36 }
 0x157   :  { %v425_v38 = vpop.f32.mrf.mxu0 }
 0x158   :  { %v426_v39 = vadd.f32 %v425_v38, %v396_v34 }
 0x15a   :  { %v482_v41 = vadd.f32 %v470_v37, %v426_v39  ;;  %v405_v42 = vpop.f32.mrf.mxu3 }
 0x15c   :  { %v490_v44 = vadd.f32 %v578_v40, %v482_v41 }
 0x15d   :  { %v434_v55 = vpop.f32.mrf.mxu2 }
 0x15e   :  { %v494_v45 = vmax.f32 %v490_v44, 0.0  ;;  %v435_v58 = vadd.f32 %v434_v55, %v405_v42 }
 0x15f   :  { %v428_v46 = vpop.f32.mrf.mxu0 }
 0x160   :  { %498 = vst [vmem:[#allocation11] sm:$0xff] %v494_v45  ;;  %v429_v47 = vadd.f32 %v428_v46, %v399_v35 }
 0x162   :  { %v483_v50 = vadd.f32 %v473_v48, %v429_v47  ;;  %v476_v51 = vpop.f32.mrf.mxu3 }
 0x163   :  { %v484_v52 = vadd.f32 %v476_v51, %v432_v49 }
 0x164   :  { %v491_v53 = vadd.f32 %v578_v40, %v483_v50 }
 0x165   :  { %v492_v54 = vadd.f32 %v578_v40, %v484_v52 }
 0x166   :  { %v495_v56 = vmax.f32 %v491_v53, 0.0 }
 0x167   :  { %v496_v57 = vmax.f32 %v492_v54, 0.0 }
 0x168   :  { %499 = vst [vmem:[#allocation11 + $0x8] sm:$0xff] %v495_v56 }
 0x169   :  { %500 = vst [vmem:[#allocation11 + $0x10] sm:$0xff] %v496_v57 }
 0x16a   :  { %v479_v59 = vpop.f32.mrf.mxu3 }
 0x16b   :  { %v485_v60 = vadd.f32 %v479_v59, %v435_v58 }
 0x16d   :  { %v493_v61 = vadd.f32 %v578_v40, %v485_v60 }
 0x16f   :  { %v497_v62 = vmax.f32 %v493_v61, 0.0 }
 0x171   :  { %501 = vst [vmem:[#allocation11 + $0x18] sm:$0xff] %v497_v62 }
 0x172   :  { %514 = dma.vmem_to_hbm [thread:$0]  %s507_s28, 512, %s509_s8, [#allocation4], %s732_s9, %s732_s9, %s733_s10  }
 0x173   :  { %729 = dma.done.wait [#allocation4], 512  }
 0x174   :  { %730 = vsyncadd [#allocation4], 4294966784 }
 0x175   :  { %519 = vsyncpa [#allocation3], 1 }
 0x176   :  { %520 = vsyncpa [#allocation6], 1 }
 0x177   :  { %521 = vsyncpa [#allocation9], 1 }
 0x178   :  { %522 = vsyncpa [#allocation4], 1 }

</bundles_post_ra>
